<compile_context>
chip_gen: v5e
topology: v5e:2x2
jax: 0.10.0
libtpu: 0.0.40
codegen_flags: <defaults>
</compile_context>

<pallas_src>
import jax
import jax.numpy as jnp
from jax.experimental import pallas as pl
from jax.experimental.pallas import tpu as pltpu


def _round_up(x, m):
    return ((x + m - 1) // m) * m


def _gp_sumsq_kernel(g_ref, out_ref, acc_ref):
    """Per-sample streaming sum-of-squares.

    g_ref:   (1, tile_rows, 128) block of the (zero-padded) flattened gradient.
    out_ref: (1, 8, 128) per-sample output block; filled with the scalar sumsq.
    acc_ref: (8, 128) f32 VMEM accumulator (one vreg), persists across k steps.
    """
    k = pl.program_id(1)

    @pl.when(k == 0)
    def _():
        acc_ref[...] = jnp.zeros_like(acc_ref)

    # Upcast per block (needed for bf16 grads, free for f32), square, and
    # accumulate vreg-wise: reshape groups sublanes in native (8,128) tiles, so
    # the axis-0 sum is pure element-wise VPU adds (no XLU in the steady state).
    g = g_ref[...].astype(jnp.float32)            # (1, tile_rows, 128)
    g2 = (g * g).reshape(-1, 8, 128)              # (tile_rows // 8, 8, 128)
    acc_ref[...] += jnp.sum(g2, axis=0)

    @pl.when(k == pl.num_programs(1) - 1)
    def _():
        sumsq = jnp.sum(acc_ref[...])             # single XLU reduce per sample
        out_ref[...] = jnp.full(out_ref.shape, sumsq, dtype=jnp.float32)


def gradient_penalty_from_grad(grad_flat):
    """grad_flat: (B, N) gradient of critic output w.r.t. interp (any float dtype).

    Returns loss = mean_b((||grad_b||_2 - 1)^2).
    """
    B, N = grad_flat.shape
    itemsize = jnp.dtype(grad_flat.dtype).itemsize

    # ~2 MiB input blocks of shape (tile_rows, 128); tile_rows multiple of 8.
    target_rows = max(8, ((2 << 20) // (128 * itemsize)) // 8 * 8)
    R = _round_up(N, 128) // 128                  # rows of 128 lanes
    tile_rows = min(target_rows, _round_up(R, 8))
    R_pad = _round_up(R, tile_rows)
    N_pad = R_pad * 128

    if N_pad != N:
        # Zero padding is exact for a sum of squares.
        grad_flat = jnp.pad(grad_flat, ((0, 0), (0, N_pad - N)))
    g3 = grad_flat.reshape(B, R_pad, 128)
    K = R_pad // tile_rows

    partial = pl.pallas_call(
        _gp_sumsq_kernel,
        out_shape=jax.ShapeDtypeStruct((B, 8, 128), jnp.float32),
        grid_spec=pltpu.PrefetchScalarGridSpec(
            num_scalar_prefetch=0,
            grid=(B, K),
            in_specs=[pl.BlockSpec((1, tile_rows, 128), lambda b, k: (b, k, 0))],
            out_specs=pl.BlockSpec((1, 8, 128), lambda b, k: (b, 0, 0)),
            scratch_shapes=[pltpu.VMEM((8, 128), jnp.float32)],
        ),
        compiler_params=pltpu.CompilerParams(
            dimension_semantics=("parallel", "arbitrary")),
    )(g3)

    sumsq = partial[:, 0, 0]                      # (B,) per-sample ||grad||^2
    norm = jnp.sqrt(sumsq)
    return jnp.mean((norm - 1.0) ** 2)


def gradient_penalty_loss(interp, critic_fn):
    """Full forward pass mirroring GradientPenaltyLoss.forward.

    interp: (B, C, H, W).  critic_fn: interp -> interp_crit (any shape).
    """
    # TODO(synk): torch.autograd.grad(create_graph=True) is autodiff glue, not a
    # kernel op — implemented with jax.vjp outside the Pallas kernel.
    interp_crit, vjp_fn = jax.vjp(critic_fn, interp)
    grad_outputs = jnp.ones_like(interp_crit)     # get_grad_outputs(...)
    (grad_interp,) = vjp_fn(grad_outputs)         # torch.autograd.grad(...)
    B = grad_interp.shape[0]
    grad_flat = grad_interp.reshape(B, -1)        # keep native dtype; kernel upcasts
    return gradient_penalty_from_grad(grad_flat)


if __name__ == "__main__":
    key = jax.random.PRNGKey(0)
    k_x, k_w = jax.random.split(key)

    B, C, H, W = 2, 4, 16, 16
    N = C * H * W

    # Deterministic synthetic critic parameters (the original module has no
    # trainable params; a critic is needed to have a gradient to penalize).
    W_crit = jax.random.normal(k_w, (N, 1), dtype=jnp.float32) * 0.05

    def critic_fn(x):
        xf = x.reshape(x.shape[0], -1)
        return jnp.tanh(xf @ W_crit)              # (B, 1) critic score

    interp = jax.random.normal(k_x, (B, C, H, W), dtype=jnp.float32)

    loss = jax.jit(lambda x: gradient_penalty_loss(x, critic_fn))(interp)
    loss = jax.block_until_ready(loss)

    # Pure-JAX reference check of the kernel's reduction path.
    crit, vjp_fn = jax.vjp(critic_fn, interp)
    (g_ref,) = vjp_fn(jnp.ones_like(crit))
    g_ref = g_ref.reshape(B, -1)
    ref = jnp.mean((jnp.linalg.norm(g_ref, axis=1) - 1.0) ** 2)
    assert jnp.allclose(loss, ref, rtol=1e-5, atol=1e-6), (loss, ref)

    print("KERNEL_OK")
</pallas_src>

<mosaic_0001>
module attributes {stable_mosaic.version = 11 : i64} {
  func.func @_gp_sumsq_kernel(%arg0: i32, %arg1: i32, %arg2: memref<1x8x128xf32, #tpu.memory_space<vmem>>, %arg3: memref<1x8x128xf32, #tpu.memory_space<vmem>>, %arg4: memref<8x128xf32, #tpu.memory_space<vmem>>) attributes {dimension_semantics = [#tpu.dimension_semantics<parallel>, #tpu.dimension_semantics<arbitrary>], iteration_bounds = array<i64: 2, 1>, scalar_prefetch = 0 : i64, scratch_operands = 1 : i64, tpu.core_type = #tpu.core_type<tc>, window_params = [{transform_indices = @transform_0, window_bounds = array<i64: 1, 8, 128>}, {transform_indices = @transform_1, window_bounds = array<i64: 1, 8, 128>}]} {
    %c0_i32 = arith.constant 0 : i32
    %0 = arith.cmpi eq, %arg1, %c0_i32 : i32
    %1 = arith.extui %0 : i1 to i32
    %c0_i32_0 = arith.constant 0 : i32
    %2 = arith.cmpi ne, %1, %c0_i32_0 : i32
    scf.if %2 {
      %cst_9 = arith.constant 0.000000e+00 : f32
      %12 = vector.broadcast %cst_9 : f32 to vector<8x128xf32>
      %c0_10 = arith.constant 0 : index
      %c0_11 = arith.constant 0 : index
      %13 = vector.load %arg4[%c0_10, %c0_11] : memref<8x128xf32, #tpu.memory_space<vmem>>, vector<8x128xf32>
      tpu.vector_store %arg4[%c0_10, %c0_11], %12 {strides = array<i32>} : memref<8x128xf32, #tpu.memory_space<vmem>>, vector<8x128xf32>,
    } else {
    }
    %c0 = arith.constant 0 : index
    %c0_1 = arith.constant 0 : index
    %c0_2 = arith.constant 0 : index
    %3 = vector.load %arg2[%c0, %c0_1, %c0_2] : memref<1x8x128xf32, #tpu.memory_space<vmem>>, vector<1x8x128xf32>
    %4 = arith.mulf %3, %3 : vector<1x8x128xf32>
    %c0_3 = arith.constant 0 : index
    %c0_4 = arith.constant 0 : index
    %5 = vector.load %arg4[%c0_3, %c0_4] : memref<8x128xf32, #tpu.memory_space<vmem>>, vector<8x128xf32>
    %cst = arith.constant dense<0.000000e+00> : vector<8x128xf32>
    %6 = vector.multi_reduction <add>, %4, %cst [0] : vector<1x8x128xf32> to vector<8x128xf32>
    %7 = arith.addf %5, %6 : vector<8x128xf32>
    %c0_5 = arith.constant 0 : index
    %c0_6 = arith.constant 0 : index
    %8 = vector.load %arg4[%c0_5, %c0_6] : memref<8x128xf32, #tpu.memory_space<vmem>>, vector<8x128xf32>
    tpu.vector_store %arg4[%c0_5, %c0_6], %7 {strides = array<i32>} : memref<8x128xf32, #tpu.memory_space<vmem>>, vector<8x128xf32>,
    %c0_i32_7 = arith.constant 0 : i32
    %9 = arith.cmpi eq, %arg1, %c0_i32_7 : i32
    %10 = arith.extui %9 : i1 to i32
    %c0_i32_8 = arith.constant 0 : i32
    %11 = arith.cmpi ne, %10, %c0_i32_8 : i32
    scf.if %11 {
      %c0_9 = arith.constant 0 : index
      %c0_10 = arith.constant 0 : index
      %12 = vector.load %arg4[%c0_9, %c0_10] : memref<8x128xf32, #tpu.memory_space<vmem>>, vector<8x128xf32>
      %13 = vector.shape_cast %12 : vector<8x128xf32> to vector<1x8x128xf32>
      %cst_11 = arith.constant dense<0.000000e+00> : vector<1xf32>
      %14 = vector.multi_reduction <add>, %13, %cst_11 [1, 2] : vector<1x8x128xf32> to vector<1xf32>
      %15 = vector.shape_cast %14 : vector<1xf32> to vector<1x1x1xf32>
      %16 = vector.extract %15[0, 0, 0] : f32 from vector<1x1x1xf32>
      %17 = vector.broadcast %16 : f32 to vector<1x8x128xf32>
      %c0_12 = arith.constant 0 : index
      %c0_13 = arith.constant 0 : index
      %c0_14 = arith.constant 0 : index
      %18 = vector.load %arg3[%c0_12, %c0_13, %c0_14] : memref<1x8x128xf32, #tpu.memory_space<vmem>>, vector<1x8x128xf32>
      tpu.vector_store %arg3[%c0_12, %c0_13, %c0_14], %17 {strides = array<i32>} : memref<1x8x128xf32, #tpu.memory_space<vmem>>, vector<1x8x128xf32>,
    } else {
    }
    return
  }
  func.func @transform_0(%arg0: i32, %arg1: i32) -> (i32, i32, i32) {
    %c0_i32 = arith.constant 0 : i32
    %c0_i32_0 = arith.constant 0 : i32
    return %arg0, %arg1, %c0_i32 : i32, i32, i32
  }
  func.func @transform_1(%arg0: i32, %arg1: i32) -> (i32, i32, i32) {
    %c0_i32 = arith.constant 0 : i32
    %c0_i32_0 = arith.constant 0 : i32
    %c0_i32_1 = arith.constant 0 : i32
    return %arg0, %c0_i32, %c0_i32_0 : i32, i32, i32
  }
}

</mosaic_0001>

<bundles_post_ra>
// kernel: _lambda_.1
= control target key start
LH: loop header
LB: loop body
LE: loop exit
PB: predicated region body
PF: predicated region fallthrough
CT: control target
= control target key end

     0   :  { %s294_s6 = smov 0   ;;  %s296_s7 = smov 0   ;;  %s324_s0 = inlined_call_operand.vmem [shape: f32[2,8,128], index: 0, kind: input, shape index: {}]   ;;  %s325_s1 = inlined_call_operand.vmem [shape: f32[2,8,128], index: 1, kind: output, shape index: {}]  }
   0x1   :  { %s298_s8 = smov 0  }
   0x2 LB: > { %s23_s9 = sadd.s32 1, %s278_s7  ;;  %p229_p0 = scmp.ge.s32.totalorder %s282_s8, 1  ;;  %s282_s8 = sphi %s298_s8, %s11_s8   ;;  %s278_s7 = sphi %s296_s7, %s327_s7   ;;  %s274_s6 = sphi %s294_s6, %s326_s6  }
   0x3   : > { %p25_p1 = scmp.ge.s32.totalorder %s23_s9, 2  ;;  %p103_p2 = scmp.lt.s32.totalorder %s282_s8, 3 }
   0x5   : > { %s329_s9 = smov (%p25_p1, %s23_s9), 0  ;;  %p104_p3 = pnand %p229_p0, %p103_p2 }
   0x6   : > { %p124_p4 = scmp.lt.s32.totalorder (!%p104_p3), %s274_s6, 1 }
   0x7   : > { %107 = sbr.rel (%p104_p3) target bundleno = 198 (0xc6), region = 24 }
   0xc   : > { %s331_s6 = smov (!%p124_p4, %s274_s6), 1 }
   0xd   : > { %s230_s10 = sshll.u32 %s331_s6, 3 }
   0xe   : > { %s130_s13 = scalar_lea.vmem %s324_s0, %s230_s10  ;;  %s134_s16 = scalar_lea.vmem %s325_s1, %s230_s10 }
   0xf   : > { %v140_v0 = vld [vmem:[%s130_s13] sm:$0xff] }
  0x10   : > { %v141_v1 = vmul.f32 %v140_v0, %v140_v0 }
  0x12   : > { %150 = vadd.xlane.f32.xlu0 %v141_v1 }
  0x85   : > { %v151_v2 = vpop.xlane.xlu0 %150 }
  0x86   : > { %v152_v3 = vrot.slane %v151_v2, 4 }
  0x88   : > { %v153_v4 = vadd.f32 %v152_v3, %v151_v2 }
  0x8a   : > { %v154_v5 = vrot.slane %v153_v4, 2 }
  0x8c   : > { %v155_v6 = vadd.f32 %v154_v5, %v153_v4 }
  0x8e   : > { %v156_v7 = vrot.slane %v155_v6, 1 }
  0x90   : > { %v157_v8 = vadd.f32 %v156_v7, %v155_v6 }
  0x92   : > { %234 = vpush %v157_v8 }
  0xc3   : > { %s235_s17 = spop %234 }
  0xc4   : > { %v159_v9 = vstv %s235_s17 }
  0xc5   : > { %160 = vst [vmem:[%s134_s16] sm:$0xff] %v159_v9 }
  0xc6 PF: > { %s11_s8 = sadd.s32 1, %s282_s8   ;;  %s326_s6 = smov %s278_s7 }
  0xc7   : > { %p8_p5 = scmp.ge.s32.totalorder %s11_s8, 4   ;;  %s327_s7 = smov %s329_s9 }
  0xc9   :  { %10 = sbr.rel (!%p8_p5) target bundleno = 2 (0x2), region = 62 }

</bundles_post_ra>
